<compile_context>
chip_gen: v5e
topology: v5e:2x2
jax: 0.10.0
libtpu: 0.0.40
codegen_flags: <defaults>
</compile_context>

<pallas_src>
import jax
import jax.numpy as jnp
from jax.experimental import pallas as pl
from jax.experimental.pallas import tpu as pltpu


def _round_up(n, m):
    return (n + m - 1) // m * m


# ----------------------------------------------------------------------------
# Kernel: one batch tile through fc1 -> ReLU -> fc2, all in VMEM.
# ----------------------------------------------------------------------------
def mlp_kernel(x_ref, w1_ref, b1_ref, w2_ref, b2_ref, o_ref):
    # x arrives f32; cast to bf16 for the MXU feed (f32 accumulation kept).
    x = x_ref[...].astype(jnp.bfloat16)
    h = jnp.dot(x, w1_ref[...], preferred_element_type=jnp.float32)
    h = jnp.maximum(h + b1_ref[...], 0.0)                 # bias + ReLU in f32
    out = jnp.dot(h.astype(jnp.bfloat16), w2_ref[...],
                  preferred_element_type=jnp.float32)
    o_ref[...] = (out + b2_ref[...]).astype(o_ref.dtype)  # lane-dense bf16 store


# ----------------------------------------------------------------------------
# One-time parameter packing (outside the hot path).
# ----------------------------------------------------------------------------
def pack_params(w1, b1, w2, b2):
    """w1: (num_inputs, hidden), b1: (1, hidden), w2: (hidden, num_digits),
    b2: (1, num_digits) — all f32, stored transposed vs PyTorch (in, out)."""
    num_inputs, hidden = w1.shape
    num_digits = w2.shape[1]
    hp = _round_up(hidden, 128)
    op = _round_up(num_digits, 128)

    # Zero padding is exact: padded W1 cols -> zero activations (ReLU(0)=0)
    # -> multiplied into zero W2 rows; padded W2 cols / b2 entries are sliced
    # off in the wrapper.
    w1p = jnp.pad(w1, ((0, 0), (0, hp - hidden))).astype(jnp.bfloat16)
    b1p = jnp.pad(b1.reshape(1, -1), ((0, 0), (0, hp - hidden))).astype(jnp.float32)
    w2p = jnp.pad(w2, ((0, hp - hidden), (0, op - num_digits))).astype(jnp.bfloat16)
    b2p = jnp.pad(b2.reshape(1, -1), ((0, 0), (0, op - num_digits))).astype(jnp.float32)

    return {
        "w1p": w1p, "b1p": b1p, "w2p": w2p, "b2p": b2p,
        # raw f32 params kept for the tiny-batch XLA fast path (~40 KiB total)
        "w1": w1, "b1": b1.reshape(1, -1), "w2": w2, "b2": b2.reshape(1, -1),
        "num_inputs": num_inputs, "num_digits": num_digits, "hp": hp, "op": op,
    }


def _choose_tiling(B):
    """Pick batch tile TB and (even where it matters) grid step count."""
    TB_MAX = 2048
    if B <= 32:
        TB = _round_up(B, 16)          # bf16 packs 16 sublanes / vreg
        steps = 1
    elif B <= 2 * TB_MAX:
        TB = _round_up(pl.cdiv(B, 2), 16)   # exactly 2 tiles -> even grid (v7x)
        steps = 2
    else:
        TB = TB_MAX
        steps = pl.cdiv(B, TB)
        if steps % 2 == 1:              # keep grid even so both v7x TCs work
            steps += 1
    return TB, steps


# ----------------------------------------------------------------------------
# Forward wrapper.
# ----------------------------------------------------------------------------
def mlp_forward(x, params, *, min_pallas_batch=256):
    """x: (B, num_inputs) f32 -> (B, num_digits) f32. Same math as
    PyTorch fc2(relu(fc1(x)))."""
    B, num_inputs = x.shape
    assert num_inputs == params["num_inputs"]
    num_digits = params["num_digits"]
    hp, op = params["hp"], params["op"]

    # Tiny batches: pallas_call launch + pad/slice overhead dwarfs the work.
    if B < min_pallas_batch:
        h = jnp.maximum(x @ params["w1"] + params["b1"], 0.0)
        return h @ params["w2"] + params["b2"]

    TB, steps = _choose_tiling(B)
    Bp = TB * steps
    xp = x if Bp == B else jnp.pad(x, ((0, Bp - B), (0, 0)))  # f32, no cast copy

    flops = 2 * Bp * (num_inputs * hp + hp * op)
    bytes_accessed = (Bp * num_inputs * 4            # x in (f32)
                      + num_inputs * hp * 2 + hp * 4  # w1p + b1p
                      + hp * op * 2 + op * 4          # w2p + b2p
                      + Bp * op * 2)                  # out (bf16)

    out = pl.pallas_call(
        mlp_kernel,
        out_shape=jax.ShapeDtypeStruct((Bp, op), jnp.bfloat16),
        grid_spec=pl.GridSpec(
            grid=(steps,),
            in_specs=[
                # x tiled along batch; weights/biases stay resident in VMEM.
                pl.BlockSpec((TB, num_inputs), lambda i: (i, 0)),
                pl.BlockSpec((num_inputs, hp), lambda i: (0, 0)),
                pl.BlockSpec((1, hp), lambda i: (0, 0)),
                pl.BlockSpec((hp, op), lambda i: (0, 0)),
                pl.BlockSpec((1, op), lambda i: (0, 0)),
            ],
            out_specs=pl.BlockSpec((TB, op), lambda i: (i, 0)),
        ),
        compiler_params=pltpu.CompilerParams(
            # Independent batch tiles: shard across v7x's 2 TensorCores,
            # no-op on single-TC v5e/v6e.
            dimension_semantics=("parallel",)),
        cost_estimate=pl.CostEstimate(flops=flops,
                                      bytes_accessed=bytes_accessed,
                                      transcendentals=0),
    )(xp, params["w1p"], params["b1p"], params["w2p"], params["b2p"])

    # Strip batch / lane padding; return f32 logits like the reference.
    return out[:B, :num_digits].astype(jnp.float32)


def init_params(key, num_inputs, num_digits, hidden=100, dtype=jnp.float32):
    """Deterministic init mimicking nn.Linear's uniform(-1/sqrt(fan_in), ...).
    Weights stored transposed vs PyTorch: (in, out)."""
    k1, k2, k3, k4 = jax.random.split(key, 4)
    bound1 = 1.0 / (num_inputs ** 0.5)
    bound2 = 1.0 / (hidden ** 0.5)
    w1 = jax.random.uniform(k1, (num_inputs, hidden), dtype, -bound1, bound1)
    b1 = jax.random.uniform(k2, (1, hidden), dtype, -bound1, bound1)
    w2 = jax.random.uniform(k3, (hidden, num_digits), dtype, -bound2, bound2)
    b2 = jax.random.uniform(k4, (1, num_digits), dtype, -bound2, bound2)
    return w1, b1, w2, b2


if __name__ == "__main__":
    key = jax.random.PRNGKey(0)
    kx, kx2, kp = jax.random.split(key, 3)

    num_inputs = 32
    num_digits = 10

    w1, b1, w2, b2 = init_params(kp, num_inputs, num_digits)
    params = pack_params(w1, b1, w2, b2)   # packed once, outside the hot path

    # --- Pallas path (batch large enough to exercise the kernel) -----------
    batch = 256
    x = jax.random.normal(kx, (batch, num_inputs), jnp.float32)
    out = mlp_forward(x, params)
    out = jax.block_until_ready(out)

    ref = jnp.maximum(x @ w1 + b1, 0.0) @ w2 + b2
    assert out.shape == (batch, num_digits)
    # Tolerance relaxed: bf16 MXU operands + bf16 output store
    # (f32 accumulation kept via preferred_element_type).
    assert jnp.allclose(out, ref, atol=5e-2, rtol=5e-2), (
        float(jnp.max(jnp.abs(out - ref))))

    # --- Tiny-batch XLA fast path (exact f32 math) --------------------------
    x_small = jax.random.normal(kx2, (8, num_inputs), jnp.float32)
    out_small = jax.block_until_ready(mlp_forward(x_small, params))
    ref_small = jnp.maximum(x_small @ w1 + b1, 0.0) @ w2 + b2
    assert jnp.allclose(out_small, ref_small, atol=1e-5, rtol=1e-5)

    print("KERNEL_OK")
</pallas_src>

<mosaic_0001>
module attributes {stable_mosaic.version = 11 : i64} {
  func.func @mlp_kernel(%arg0: i32, %arg1: memref<128x32xf32, #tpu.memory_space<vmem>>, %arg2: memref<32x128xbf16, #tpu.memory_space<vmem>>, %arg3: memref<1x128xf32, #tpu.memory_space<vmem>>, %arg4: memref<128x128xbf16, #tpu.memory_space<vmem>>, %arg5: memref<1x128xf32, #tpu.memory_space<vmem>>, %arg6: memref<128x128xbf16, #tpu.memory_space<vmem>>) attributes {dimension_semantics = [#tpu.dimension_semantics<parallel>], iteration_bounds = array<i64: 2>, scalar_prefetch = 0 : i64, scratch_operands = 0 : i64, tpu.core_type = #tpu.core_type<tc>, window_params = [{transform_indices = @transform_0, window_bounds = array<i64: 128, 32>}, {pipeline_mode = #tpu.pipeline_mode<synchronous>, transform_indices = @transform_1, window_bounds = array<i64: 32, 128>}, {pipeline_mode = #tpu.pipeline_mode<synchronous>, transform_indices = @transform_2, window_bounds = array<i64: 1, 128>}, {pipeline_mode = #tpu.pipeline_mode<synchronous>, transform_indices = @transform_3, window_bounds = array<i64: 128, 128>}, {pipeline_mode = #tpu.pipeline_mode<synchronous>, transform_indices = @transform_4, window_bounds = array<i64: 1, 128>}, {transform_indices = @transform_5, window_bounds = array<i64: 128, 128>}]} {
    %c0 = arith.constant 0 : index
    %c0_0 = arith.constant 0 : index
    %0 = vector.load %arg1[%c0, %c0_0] : memref<128x32xf32, #tpu.memory_space<vmem>>, vector<128x32xf32>
    %1 = arith.truncf %0 : vector<128x32xf32> to vector<128x32xbf16>
    %c0_1 = arith.constant 0 : index
    %c0_2 = arith.constant 0 : index
    %2 = vector.load %arg2[%c0_1, %c0_2] : memref<32x128xbf16, #tpu.memory_space<vmem>>, vector<32x128xbf16>
    %cst = arith.constant dense<0.000000e+00> : vector<128x128xf32>
    %3 = tpu.matmul %1, %2, %cst {dimension_numbers = #tpu.dot_dimension_numbers<[1], [0], [0], [1], [0, 0, 1, 1], [], []>} : vector<128x32xbf16>, vector<32x128xbf16>, vector<128x128xf32> -> vector<128x128xf32>
    %c0_3 = arith.constant 0 : index
    %c0_4 = arith.constant 0 : index
    %4 = vector.load %arg3[%c0_3, %c0_4] : memref<1x128xf32, #tpu.memory_space<vmem>>, vector<1x128xf32>
    %5 = vector.broadcast %4 : vector<1x128xf32> to vector<128x128xf32>
    %6 = arith.addf %3, %5 : vector<128x128xf32>
    %cst_5 = arith.constant 0.000000e+00 : f32
    %7 = vector.broadcast %cst_5 : f32 to vector<128x128xf32>
    %8 = arith.maximumf %6, %7 : vector<128x128xf32>
    %9 = arith.truncf %8 : vector<128x128xf32> to vector<128x128xbf16>
    %c0_6 = arith.constant 0 : index
    %c0_7 = arith.constant 0 : index
    %10 = vector.load %arg4[%c0_6, %c0_7] : memref<128x128xbf16, #tpu.memory_space<vmem>>, vector<128x128xbf16>
    %cst_8 = arith.constant dense<0.000000e+00> : vector<128x128xf32>
    %11 = tpu.matmul %9, %10, %cst_8 {dimension_numbers = #tpu.dot_dimension_numbers<[1], [0], [0], [1], [0, 0, 1, 1], [], []>} : vector<128x128xbf16>, vector<128x128xbf16>, vector<128x128xf32> -> vector<128x128xf32>
    %c0_9 = arith.constant 0 : index
    %c0_10 = arith.constant 0 : index
    %12 = vector.load %arg5[%c0_9, %c0_10] : memref<1x128xf32, #tpu.memory_space<vmem>>, vector<1x128xf32>
    %13 = vector.broadcast %12 : vector<1x128xf32> to vector<128x128xf32>
    %14 = arith.addf %11, %13 : vector<128x128xf32>
    %15 = arith.truncf %14 : vector<128x128xf32> to vector<128x128xbf16>
    %c0_11 = arith.constant 0 : index
    %c0_12 = arith.constant 0 : index
    %16 = vector.load %arg6[%c0_11, %c0_12] : memref<128x128xbf16, #tpu.memory_space<vmem>>, vector<128x128xbf16>
    tpu.vector_store %arg6[%c0_11, %c0_12], %15 {strides = array<i32>} : memref<128x128xbf16, #tpu.memory_space<vmem>>, vector<128x128xbf16>,
    return
  }
  func.func @transform_0(%arg0: i32) -> (i32, i32) {
    %c0_i32 = arith.constant 0 : i32
    %c0_i32_0 = arith.constant 0 : i32
    return %arg0, %c0_i32 : i32, i32
  }
  func.func @transform_1(%arg0: i32) -> (i32, i32) {
    %c0_i32 = arith.constant 0 : i32
    %c0_i32_0 = arith.constant 0 : i32
    %c0_i32_1 = arith.constant 0 : i32
    return %c0_i32, %c0_i32_0 : i32, i32
  }
  func.func @transform_2(%arg0: i32) -> (i32, i32) {
    %c0_i32 = arith.constant 0 : i32
    %c0_i32_0 = arith.constant 0 : i32
    %c0_i32_1 = arith.constant 0 : i32
    return %c0_i32, %c0_i32_0 : i32, i32
  }
  func.func @transform_3(%arg0: i32) -> (i32, i32) {
    %c0_i32 = arith.constant 0 : i32
    %c0_i32_0 = arith.constant 0 : i32
    %c0_i32_1 = arith.constant 0 : i32
    return %c0_i32, %c0_i32_0 : i32, i32
  }
  func.func @transform_4(%arg0: i32) -> (i32, i32) {
    %c0_i32 = arith.constant 0 : i32
    %c0_i32_0 = arith.constant 0 : i32
    %c0_i32_1 = arith.constant 0 : i32
    return %c0_i32, %c0_i32_0 : i32, i32
  }
  func.func @transform_5(%arg0: i32) -> (i32, i32) {
    %c0_i32 = arith.constant 0 : i32
    %c0_i32_0 = arith.constant 0 : i32
    return %arg0, %c0_i32 : i32, i32
  }
}

</mosaic_0001>

<bundles_post_ra>
// kernel: tpu_custom_call.1
= control target key start
LH: loop header
LB: loop body
LE: loop exit
PB: predicated region body
PF: predicated region fallthrough
CT: control target
= control target key end

     0   :  { %10 = vsyncpa [#allocation3], 0  ;;  %s1024_s0 = inlined_call_operand.vmem [shape: f32[256,32], index: 0, kind: input, shape index: {}]   ;;  %s1025_s1 = inlined_call_operand.vmem [shape: bf16[32,128], index: 1, kind: input, shape index: {}]   ;;  %s1026_s2 = inlined_call_operand.vmem [shape: f32[1,128], index: 2, kind: input, shape index: {}]   ;;  %s1027_s3 = inlined_call_operand.vmem [shape: bf16[128,128], index: 3, kind: input, shape index: {}]   ;;  %s1028_s4 = inlined_call_operand.vmem [shape: f32[1,128], index: 4, kind: input, shape index: {}]   ;;  %s1029_s5 = inlined_call_operand.hbm [shape: bf16[256,128], index: 5, kind: output, shape index: {}]  }
   0x1   :  { %12 = vsyncpa [#allocation3 + $0x1], 0  ;;  %s863_s18 = smov 0   ;;  %s865_s19 = smov 0  }
   0x2   :  { %s867_s20 = smov 0   ;;  %s869_s21 = smov 0  }
   0x3 LB: > { %s884_s22 = sadd.s32 4294967295, %s829_s21   ;;  %s596_s23 = sadd.s32 4294967294, %s829_s21   ;;  %s829_s21 = sphi %s869_s21, %s1035_s21   ;;  %s825_s20 = sphi %s867_s20, %s1034_s20   ;;  %s821_s19 = sphi %s865_s19, %s1033_s19   ;;  %s817_s18 = sphi %s863_s18, %s1032_s18  }
   0x4   : > { %s888_s24 = sadd.s32 1, %s829_s21   ;;  %s135_s25 = sadd.s32 1, %s825_s20 }
   0x5   : > { %s132_s26 = ssub.s32 %s829_s21, %s888_s24  ;;  %p145_p0 = scmp.ne.s32.totalorder %s825_s20, %s821_s19 }
   0x6   : > { %p133_p1 = scmp.eq.s32.totalorder %s132_s26, 0  ;;  %p146_p2 = scmp.eq.s32.totalorder %s884_s22, 1 }
   0x7   : > { %p151_p3 = scmp.ne.s32.totalorder %s821_s19, %s817_s18  ;;  %p152_p4 = scmp.eq.s32.totalorder %s596_s23, 1 }
   0x8   : > { %s899_s27 = scalar_select %p133_p1, %s825_s20, %s135_s25  }
   0x9   : > { %p901_p5 = por %p146_p2, %p145_p0  ;;  %p905_p6 = por %p152_p4, %p151_p3 }
   0xa   : > { %p599_p7 = scmp.ge.s32.totalorder %s829_s21, 1  ;;  %p191_p8 = scmp.lt.s32.totalorder %s829_s21, 3 }
   0xc   : > { %p192_p9 = pnand %p599_p7, %p191_p8 }
   0xd   : > { %s601_s7 = sshll.u32 (!%p192_p9), %s884_s22, 4  ;;  %s216_s16 = sand.u32 (!%p192_p9), 1, %s821_s19  }
   0xe   : > { %195 = sbr.rel (%p192_p9) target bundleno = 427 (0x1ab), region = 40  ;;  %p220_p10 = scmp.lt.s32.totalorder (!%p192_p9), %s601_s7, 31 }
   0xf   : > { %s600_s25 = sshll.u32 (!%p192_p9), %s216_s16, 6  ;;  %s666_s30 = sshll.u32 (!%p192_p9), %s884_s22, 6 }
  0x10   : > { %s980_s26 = scalar_lea.vmem (!%p192_p9), [#allocation2], %s600_s25  ;;  %s530_s8 = scalar_lea.hbm (!%p192_p9), %s1029_s5, %s666_s30 }
  0x11   : > { %s531_s9 = sshll.u32 (!%p192_p9), %s980_s26, 4  ;;  %s519_s11 = scalar_lea.sflag (!%p192_p9), [#allocation3], %s216_s16  ;;  %s532_s9 = int_to_ptr.vmem [resolvable:$true] %s531_s9 }
  0x12   : > { %s787_s15 = scalar_lea.hbm (!%p192_p9), %s1029_s5, 128 }
  0x13   : > { %v657_v0 = vld [vmem:[%s1025_s1 + $0x8] sm:$0xff]  ;;  %v656_v1 = vld [vmem:[%s1025_s1] sm:$0xff]  ;;  %s1037_s7 = smov (!%p220_p10, %s601_s7), 31  ;;  %vm271_vm0 = vcmask 261120   ;;  %v665_v14 = vld [vmem:[%s1027_s3 + $0x38] sm:$0xff] }
  0x14   : > { %302 = vmatpush.bf16.msra.mxu0 %v657_v0  ;;  %714 = vmatpush.bf16.msra.mxu3 %v657_v0  ;;  %s602_s10 = sshll.u32 %s1037_s7, 3  ;;  %v664_v15 = vld [vmem:[%s1027_s3 + $0x30] sm:$0xff]  ;;  %v663_v16 = vld [vmem:[%s1027_s3 + $0x28] sm:$0xff]  ;;  %v662_v22 = vld [vmem:[%s1027_s3 + $0x20] sm:$0xff] }
  0x15   : > { %s921_s13 = scalar_lea.vmem %s1024_s0, %s602_s10  ;;  %437 = vmatpush.bf16.msra.mxu1 %v665_v14  ;;  %716 = vmatpush.bf16.msra.mxu2 %v665_v14  ;;  %v661_v30 = vld [vmem:[%s1027_s3 + $0x18] sm:$0xff]  ;;  %v660_v31 = vld [vmem:[%s1027_s3 + $0x10] sm:$0xff]  ;;  %v659_v32 = vld [vmem:[%s1027_s3 + $0x8] sm:$0xff]  ;;  %s533_s10 = sshll.u32 %s530_s8, 4  ;;  %s534_s10 = int_to_ptr.hbm [resolvable:$true] %s533_s10 }
  0x16   : > { %v227_v2 = vld [vmem:[%s921_s13] sm:$0xff]  ;;  %v228_v3 = vld [vmem:[%s921_s13 + $0x8] sm:$0xff]  ;;  %v229_v5 = vld [vmem:[%s921_s13 + $0x10] sm:$0xff]  ;;  %s781_s12 = sshra.s32 %s534_s10, 4  ;;  %s782_s12 = int_to_ptr.hbm [resolvable:$true] %s781_s12 }
  0x17   : > { %v243_v4 = vpack.c.bf16 %v228_v3, %v227_v2  ;;  %v230_v6 = vld [vmem:[%s921_s13 + $0x18] sm:$0xff]  ;;  %v231_v8 = vld [vmem:[%s921_s13 + $0x20] sm:$0xff]  ;;  %v232_v9 = vld [vmem:[%s921_s13 + $0x28] sm:$0xff]  ;;  %p788_p0 = scmp.lt.s32.totalorder %s782_s12, %s1029_s5 }
  0x18   : > { %303 = vmatpush.bf16.msra.mxu0 %v656_v1  ;;  %715 = vmatpush.bf16.msra.mxu3 %v656_v1  ;;  %v244_v7 = vpack.c.bf16 %v230_v6, %v229_v5  ;;  %v245_v10 = vpack.c.bf16 %v232_v9, %v231_v8  ;;  %v237_v11 = vld [vmem:[%s921_s13 + $0x50] sm:$0xff]  ;;  %v238_v12 = vld [vmem:[%s921_s13 + $0x58] sm:$0xff]  ;;  %v239_v19 = vld [vmem:[%s921_s13 + $0x60] sm:$0xff] }
  0x19   : > { %v248_v13 = vpack.c.bf16 %v238_v12, %v237_v11  ;;  %438 = vmatpush.bf16.msra.mxu1 %v664_v15  ;;  %717 = vmatpush.bf16.msra.mxu2 %v664_v15  ;;  %v233_v17 = vld [vmem:[%s921_s13 + $0x30] sm:$0xff]  ;;  %v234_v18 = vld [vmem:[%s921_s13 + $0x38] sm:$0xff]  ;;  %v240_v20 = vld [vmem:[%s921_s13 + $0x68] sm:$0xff] }
  0x1a   : > { %v246_v21 = vpack.c.bf16 %v234_v18, %v233_v17  ;;  %v249_v23 = vpack.c.bf16 %v240_v20, %v239_v19  ;;  %v235_v24 = vld [vmem:[%s921_s13 + $0x40] sm:$0xff]  ;;  %v236_v25 = vld [vmem:[%s921_s13 + $0x48] sm:$0xff]  ;;  %v241_v26 = vld [vmem:[%s921_s13 + $0x70] sm:$0xff] }
  0x1b   : > { %611 = vmatmul.msk.bf16.vlgmr.msra.gmra.mxu0 %vm271_vm0, %v243_v4  ;;  %616 = vmatmul.msk.bf16.vlgmr.msra.gmra.mxu3 %vm271_vm0, %v248_v13  ;;  %v242_v27 = vld [vmem:[%s921_s13 + $0x78] sm:$0xff]  ;;  %v247_v28 = vpack.c.bf16 %v236_v25, %v235_v24  ;;  %v658_v33 = vld [vmem:[%s1027_s3] sm:$0xff]  ;;  %s783_s13 = scalar_lea.hbm %s782_s12, 64 }
  0x1c   : > { %v250_v29 = vpack.c.bf16 %v242_v27, %v241_v26  ;;  %v765_v35 = vld [vmem:[%s1026_s2] ss:$0 sm:$0xff]  ;;  %p784_p11 = scmp.ne.s32.totalorder %s782_s12, %s783_s13  ;;  %p789_p1 = scmp.lt.s32.totalorder %s787_s15, %s783_s13 }
  0x1d   : > { %439 = vmatpush.bf16.msra.mxu1 %v663_v16  ;;  %718 = vmatpush.bf16.msra.mxu2 %v663_v16 }
  0x1e   : > { %p785_p12 = pnand %p784_p11, %p901_p5  ;;  %p790_p2 = por %p789_p1, %p788_p0 }
  0x20   : > { %p786_p13 = pneg %p785_p12 }
  0x21   : > { %440 = vmatpush.bf16.msra.mxu1 %v662_v22  ;;  %719 = vmatpush.bf16.msra.mxu2 %v662_v22 }
  0x22   : > { %p791_p3 = pnand %p790_p2, %p786_p13 }
  0x25   : > { %441 = vmatpush.bf16.msra.mxu1 %v661_v30  ;;  %720 = vmatpush.bf16.msra.mxu2 %v661_v30 }
  0x29   : > { %442 = vmatpush.bf16.msra.mxu1 %v660_v31  ;;  %721 = vmatpush.bf16.msra.mxu2 %v660_v31 }
  0x2b   : > { %612 = vmatmul.msk.bf16.gmra.mxu0 %vm271_vm0, %v244_v7  ;;  %617 = vmatmul.msk.bf16.gmra.mxu3 %vm271_vm0, %v249_v23 }
  0x2d   : > { %443 = vmatpush.bf16.msra.mxu1 %v659_v32  ;;  %722 = vmatpush.bf16.msra.mxu2 %v659_v32 }
  0x31   : > { %444 = vmatpush.bf16.msra.mxu1 %v658_v33  ;;  %723 = vmatpush.bf16.msra.mxu2 %v658_v33 }
  0x3b   : > { %613 = vmatmul.msk.bf16.gmra.mxu0 %vm271_vm0, %v245_v10  ;;  %618 = vmatmul.msk.bf16.gmra.mxu3 %vm271_vm0, %v250_v29 }
  0x4b   : > { %614 = vmatmul.msk.bf16.gmra.mxu0 %vm271_vm0, %v246_v21 }
  0x5b   : > { %615 = vmatmul.msk.bf16.gmra.mxu0 %vm271_vm0, %v247_v28  ;;  %v766_v28 = vld [vmem:[%s1028_s4] ss:$0 sm:$0xff] }
  0x98   : > { %v305_v34 = vpop.f32.mrf.mxu0 }
  0x99   : > { %v306_v36 = vadd.f32 %v765_v35, %v305_v34 }
  0x9b   : > { %v345_v39 = vmax.f32 %v306_v36, 0.0 }
  0x9e   : > { %v330_v0 = vpop.f32.mrf.mxu3 }
  0x9f   : > { %v331_v9 = vadd.f32 %v765_v35, %v330_v0 }
  0xa0   : > { %v307_v37 = vpop.f32.mrf.mxu0 }
  0xa1   : > { %v308_v38 = vadd.f32 %v765_v35, %v307_v37  ;;  %v355_v11 = vmax.f32 %v331_v9, 0.0 }
  0xa3   : > { %v346_v40 = vmax.f32 %v308_v38, 0.0 }
  0xa5   : > { %v361_v41 = vpack.c.bf16 %v346_v40, %v345_v39 }
  0xa6   : > { %v332_v4 = vpop.f32.mrf.mxu3 }
  0xa7   : > { %445 = vmatmul.bf16.vlgmr.msra.gmra.mxu1 %v361_v41  ;;  %v333_v10 = vadd.f32 %v765_v35, %v332_v4 }
  0xa8   : > { %v310_v42 = vpop.f32.mrf.mxu0 }
  0xa9   : > { %v311_v43 = vadd.f32 %v765_v35, %v310_v42  ;;  %v356_v12 = vmax.f32 %v333_v10, 0.0 }
  0xab   : > { %v347_v46 = vmax.f32 %v311_v43, 0.0  ;;  %v366_v13 = vpack.c.bf16 %v356_v12, %v355_v11 }
  0xae   : > { %v335_v8 = vpop.f32.mrf.mxu3 }
  0xaf   : > { %v336_v15 = vadd.f32 %v765_v35, %v335_v8 }
  0xb0   : > { %v312_v44 = vpop.f32.mrf.mxu0 }
  0xb1   : > { %v313_v45 = vadd.f32 %v765_v35, %v312_v44  ;;  %v357_v18 = vmax.f32 %v336_v15, 0.0 }
  0xb3   : > { %v348_v47 = vmax.f32 %v313_v45, 0.0 }
  0xb5   : > { %v362_v48 = vpack.c.bf16 %v348_v47, %v347_v46 }
  0xb6   : > { %v337_v14 = vpop.f32.mrf.mxu3 }
  0xb7   : > { %450 = vmatmul.bf16.gmra.mxu1 %v362_v48  ;;  %v338_v16 = vadd.f32 %v765_v35, %v337_v14 }
  0xb8   : > { %v315_v49 = vpop.f32.mrf.mxu0 }
  0xb9   : > { %v316_v50 = vadd.f32 %v765_v35, %v315_v49  ;;  %v358_v19 = vmax.f32 %v338_v16, 0.0 }
  0xbb   : > { %v349_v53 = vmax.f32 %v316_v50, 0.0  ;;  %v367_v20 = vpack.c.bf16 %v358_v19, %v357_v18 }
  0xbe   : > { %v340_v17 = vpop.f32.mrf.mxu3 }
  0xbf   : > { %v341_v22 = vadd.f32 %v765_v35, %v340_v17 }
  0xc0   : > { %v317_v51 = vpop.f32.mrf.mxu0 }
  0xc1   : > { %v318_v52 = vadd.f32 %v765_v35, %v317_v51  ;;  %v359_v24 = vmax.f32 %v341_v22, 0.0 }
  0xc3   : > { %v350_v54 = vmax.f32 %v318_v52, 0.0 }
  0xc5   : > { %v363_v55 = vpack.c.bf16 %v350_v54, %v349_v53 }
  0xc6   : > { %v342_v21 = vpop.f32.mrf.mxu3 }
  0xc7   : > { %455 = vmatmul.bf16.gmra.mxu1 %v363_v55  ;;  %v343_v23 = vadd.f32 %v765_v35, %v342_v21 }
  0xc8   : > { %v320_v56 = vpop.f32.mrf.mxu0 }
  0xc9   : > { %v321_v57 = vadd.f32 %v765_v35, %v320_v56  ;;  %v360_v25 = vmax.f32 %v343_v23, 0.0 }
  0xcb   : > { %v351_v60 = vmax.f32 %v321_v57, 0.0  ;;  %v368_v26 = vpack.c.bf16 %v360_v25, %v359_v24 }
  0xd0   : > { %v322_v58 = vpop.f32.mrf.mxu0 }
  0xd1   : > { %v323_v59 = vadd.f32 %v765_v35, %v322_v58 }
  0xd3   : > { %v352_v61 = vmax.f32 %v323_v59, 0.0 }
  0xd5   : > { %v364_v62 = vpack.c.bf16 %v352_v61, %v351_v60 }
  0xd7   : > { %460 = vmatmul.bf16.gmra.mxu1 %v364_v62 }
  0xd8   : > { %v325_v63 = vpop.f32.mrf.mxu0 }
  0xd9   : > { %v326_v1 = vadd.f32 %v765_v35, %v325_v63 }
  0xdb   : > { %v353_v5 = vmax.f32 %v326_v1, 0.0 }
  0xe0   : > { %v327_v2 = vpop.f32.mrf.mxu0 }
  0xe1   : > { %v328_v3 = vadd.f32 %v765_v35, %v327_v2 }
  0xe3   : > { %v354_v6 = vmax.f32 %v328_v3, 0.0 }
  0xe5   : > { %v365_v7 = vpack.c.bf16 %v354_v6, %v353_v5 }
  0xe7   : > { %465 = vmatmul.bf16.vlgmr.msra.gmra.mxu2 %v365_v7 }
  0xf7   : > { %470 = vmatmul.bf16.gmra.mxu2 %v366_v13 }
 0x107   : > { %475 = vmatmul.bf16.gmra.mxu2 %v367_v20 }
 0x117   : > { %480 = vmatmul.bf16.gmra.mxu2 %v368_v26 }
 0x124   : > { %v446_v27 = vpop.f32.mrf.mxu1 }
 0x125   : > { %v447_v30 = vadd.f32 %v766_v28, %v446_v27 }
 0x12c   : > { %v448_v29 = vpop.f32.mrf.mxu1 }
 0x12d   : > { %v449_v31 = vadd.f32 %v766_v28, %v448_v29 }
 0x12f   : > { %v670_v32 = vpack.c.bf16 %v449_v31, %v447_v30 }
 0x131   : > { %671 = vst [vmem:[%s980_s26] sm:$0xff] %v670_v32  }
 0x134   : > { %v451_v33 = vpop.f32.mrf.mxu1 }
 0x135   : > { %v452_v35 = vadd.f32 %v766_v28, %v451_v33 }
 0x13c   : > { %v453_v34 = vpop.f32.mrf.mxu1 }
 0x13d   : > { %v454_v36 = vadd.f32 %v766_v28, %v453_v34 }
 0x13f   : > { %v675_v37 = vpack.c.bf16 %v454_v36, %v452_v35 }
 0x141   : > { %707 = vst [vmem:[%s980_s26 + $0x8] sm:$0xff] %v675_v37  }
 0x144   : > { %v456_v38 = vpop.f32.mrf.mxu1 }
 0x145   : > { %v457_v40 = vadd.f32 %v766_v28, %v456_v38 }
 0x14c   : > { %v458_v39 = vpop.f32.mrf.mxu1 }
 0x14d   : > { %v459_v41 = vadd.f32 %v766_v28, %v458_v39 }
 0x14f   : > { %v680_v42 = vpack.c.bf16 %v459_v41, %v457_v40 }
 0x151   : > { %708 = vst [vmem:[%s980_s26 + $0x10] sm:$0xff] %v680_v42  }
 0x154   : > { %v461_v43 = vpop.f32.mrf.mxu1 }
 0x155   : > { %v462_v45 = vadd.f32 %v766_v28, %v461_v43 }
 0x15c   : > { %v463_v44 = vpop.f32.mrf.mxu1 }
 0x15d   : > { %v464_v46 = vadd.f32 %v766_v28, %v463_v44 }
 0x15f   : > { %v685_v47 = vpack.c.bf16 %v464_v46, %v462_v45 }
 0x161   : > { %709 = vst [vmem:[%s980_s26 + $0x18] sm:$0xff] %v685_v47  }
 0x16a   : > { %v466_v48 = vpop.f32.mrf.mxu2 }
 0x16b   : > { %v467_v50 = vadd.f32 %v766_v28, %v466_v48 }
 0x172   : > { %v468_v49 = vpop.f32.mrf.mxu2 }
 0x173   : > { %v469_v51 = vadd.f32 %v766_v28, %v468_v49 }
 0x175   : > { %v690_v52 = vpack.c.bf16 %v469_v51, %v467_v50 }
 0x177   : > { %710 = vst [vmem:[%s980_s26 + $0x20] sm:$0xff] %v690_v52  }
 0x17a   : > { %v471_v53 = vpop.f32.mrf.mxu2 }
 0x17b   : > { %v472_v55 = vadd.f32 %v766_v28, %v471_v53 }
 0x182   : > { %v473_v54 = vpop.f32.mrf.mxu2 }
 0x183   : > { %v474_v56 = vadd.f32 %v766_v28, %v473_v54 }
 0x185   : > { %v695_v57 = vpack.c.bf16 %v474_v56, %v472_v55 }
 0x187   : > { %711 = vst [vmem:[%s980_s26 + $0x28] sm:$0xff] %v695_v57  }
 0x18a   : > { %v476_v58 = vpop.f32.mrf.mxu2 }
 0x18b   : > { %v477_v60 = vadd.f32 %v766_v28, %v476_v58 }
 0x192   : > { %v478_v59 = vpop.f32.mrf.mxu2 }
 0x193   : > { %v479_v61 = vadd.f32 %v766_v28, %v478_v59 }
 0x195   : > { %v700_v62 = vpack.c.bf16 %v479_v61, %v477_v60 }
 0x197   : > { %712 = vst [vmem:[%s980_s26 + $0x30] sm:$0xff] %v700_v62  }
 0x19a   : > { %v481_v63 = vpop.f32.mrf.mxu2 }
 0x19b   : > { %v482_v1 = vadd.f32 %v766_v28, %v481_v63 }
 0x1a2   : > { %v483_v0 = vpop.f32.mrf.mxu2 }
 0x1a3   : > { %v484_v2 = vadd.f32 %v766_v28, %v483_v0 }
 0x1a5   : > { %v705_v3 = vpack.c.bf16 %v484_v2, %v482_v1 }
 0x1a7   : > { %713 = vst [vmem:[%s980_s26 + $0x38] sm:$0xff] %v705_v3  }
 0x1a8   : > { %794 = shalt.err (!%p791_p3)
}
 0x1a9   : > { %s831_s16 = smov 64   ;;  %s832_s25 = smov 4  }
 0x1aa   : > { %724 = dma.vmem_to_hbm [thread:$0]  (%p901_p5), %s532_s9, 1024, %s534_s10, %s519_s11, %s831_s16, %s831_s16, %s832_s25  }
 0x1ab PF: > { %p730_p4 = scmp.ge.s32.totalorder %s829_s21, 2  ;;  %s548_s26 = sand.u32 1, %s817_s18  }
 0x1ac   : > { %s549_s30 = scalar_lea.sflag [#allocation3], %s548_s26 }
 0x1ad   : > { %p727_p7 = pnand %p730_p4, %p905_p6 }
 0x1af   : > { %p728_p8 = pneg %p727_p7 }
 0x1b1   : > { %812 = dma.done.wait (%p728_p8), %s549_s30, 1024  }
 0x1b2   : > { %814 = vsyncadd (%p728_p8), %s549_s30, 4294966272  ;;  %p15_p9 = scmp.ge.s32.totalorder %s888_s24, 4   ;;  %s1032_s18 = smov %s821_s19 }
 0x1b3   : > { %s1033_s19 = smov %s825_s20  ;;  %s1034_s20 = smov %s899_s27 }
 0x1b4   : > { %s1035_s21 = smov %s888_s24  ;;  %17 = sbr.rel (!%p15_p9) target bundleno = 3 (0x3), region = 75 }
 0x1b9   :  { %555 = vsyncpa [#allocation3], 1 }
 0x1ba   :  { %557 = vsyncpa [#allocation3 + $0x1], 1 }

</bundles_post_ra>
